<compile_context>
chip_gen: v7x
topology: tpu7x:2x2x1
jax: 0.10.0
libtpu: 0.0.40
codegen_flags: <defaults>
</compile_context>

<pallas_src>
import functools

import jax
import jax.numpy as jnp
from jax.experimental import pallas as pl
from jax.experimental.pallas import tpu as pltpu

N, C, H, W = 2, 3, 16, 16
NUM_CLASSES = 8
LANE = 128


def wrap_fused_kernel(x_ref, mean_ref, inv_std_ref, w_ref, b_ref, o_ref):
    # x_ref:       (N, C*H*W)    f32, lane-dense (C*H*W = 768 = 6*128)
    # mean_ref:    (1, C*H*W)    f32 per-feature channel mean (broadcast over N)
    # inv_std_ref: (1, C*H*W)    f32 per-feature 1/std
    # w_ref:       (C*H*W, 128)  bf16 head weights, class dim padded to a lane
    # b_ref:       (1, 128)      f32 padded bias
    # o_ref:       (N, 128)      f32 padded logits
    # Normalize in f32 on the VPU (v5e-safe); cast only at the MXU dot.
    feat = (x_ref[...] - mean_ref[...]) * inv_std_ref[...]
    o_ref[...] = (
        jnp.dot(
            feat.astype(jnp.bfloat16),
            w_ref[...],
            preferred_element_type=jnp.float32,   # f32 accumulation on MXU
        )
        + b_ref[...]
    )


def wrap_init(mean, std, w, b, spatial):
    """One-time prep (model init): per-feature norm rows + padded bf16 head.

    Done once, outside the per-call forward path, so the jitted forward emits
    no repeat / reciprocal / pad ops.
    """
    feat_dim, num_classes = w.shape
    pad = (-num_classes) % LANE  # pad classes to one full lane (128)

    mean_row = jnp.repeat(mean, spatial).reshape(1, feat_dim).astype(jnp.float32)
    inv_std_row = (
        jnp.repeat(1.0 / std, spatial).reshape(1, feat_dim).astype(jnp.float32)
    )
    # TODO(synk): while the stand-in head is linear, the normalization could be
    # folded into (w, b) entirely; kept explicit so the kernel matches Wrap's
    # normalize-then-arbitrary-backbone semantics.
    w_pad = jnp.pad(w, ((0, 0), (0, pad))).astype(jnp.bfloat16)
    b_pad = jnp.pad(b, ((0, 0), (0, pad))).astype(jnp.float32)
    return mean_row, inv_std_row, w_pad, b_pad


@jax.jit
def wrap_forward(x, mean_row, inv_std_row, w_pad, b_pad):
    """Returns padded (N, 128) logits; slice [:, :num_classes] at the consumer."""
    n = x.shape[0]
    feat_dim = mean_row.shape[1]
    n_pad_classes = w_pad.shape[1]

    # Contiguous (N, C, H, W) -> (N, C*H*W): pure layout view, no data shuffle.
    x2 = x.reshape(n, feat_dim)

    cost = pl.CostEstimate(
        flops=2 * n * feat_dim * n_pad_classes,
        transcendentals=0,
        bytes_accessed=(
            x2.size * 4                      # x
            + 2 * feat_dim * 4               # mean_row + inv_std_row
            + w_pad.size * 2                 # bf16 weights
            + b_pad.size * 4                 # bias
            + n * n_pad_classes * 4          # output
        ),
    )

    # Whole problem (~0.25 MB) fits in VMEM on every generation: single
    # launch, no grid, full-array VMEM blocks, lane-dense 128-wide store.
    return pl.pallas_call(
        wrap_fused_kernel,
        out_shape=jax.ShapeDtypeStruct((n, n_pad_classes), jnp.float32),
        in_specs=[pl.BlockSpec(memory_space=pltpu.MemorySpace.VMEM)] * 5,
        out_specs=pl.BlockSpec(memory_space=pltpu.MemorySpace.VMEM),
        cost_estimate=cost,
    )(x2, mean_row, inv_std_row, w_pad, b_pad)


if __name__ == "__main__":
    key = jax.random.PRNGKey(0)
    kx, kw, kb = jax.random.split(key, 3)

    # NOTE: N can be much larger (up to ~128-256 rows are essentially free
    # given the fixed launch + weight-DMA cost); kept at 2 for the example.
    x = jax.random.uniform(kx, (N, C, H, W), dtype=jnp.float32)

    # Deterministic per-channel normalization constants (ImageNet-style).
    mean = jnp.array([0.485, 0.456, 0.406], dtype=jnp.float32)
    std = jnp.array([0.229, 0.224, 0.225], dtype=jnp.float32)

    # TODO(synk): the real wrapped backbone is an arbitrary external model; a
    # deterministic linear classifier head stands in for self.model.forward.
    w = jax.random.normal(kw, (C * H * W, NUM_CLASSES), dtype=jnp.float32) * 0.02
    b = jax.random.normal(kb, (1, NUM_CLASSES), dtype=jnp.float32) * 0.01

    # One-time init (hoisted out of the per-call forward path).
    mean_row, inv_std_row, w_pad, b_pad = wrap_init(mean, std, w, b, H * W)
    mean_row, inv_std_row, w_pad, b_pad = jax.block_until_ready(
        (mean_row, inv_std_row, w_pad, b_pad)
    )

    out_pad = wrap_forward(x, mean_row, inv_std_row, w_pad, b_pad)
    jax.block_until_ready(out_pad)
    out = out_pad[:, :NUM_CLASSES]  # lazy slice at the consumer

    # Cross-check the fused Pallas kernel against plain JAX.
    ref_norm = (x - mean.reshape(1, C, 1, 1)) / std.reshape(1, C, 1, 1)
    ref_feat = ref_norm.reshape(N, -1)
    # Exact-path reference (bf16 operands, f32 accumulation) -> tight check.
    ref_bf16 = (
        jnp.dot(
            ref_feat.astype(jnp.bfloat16),
            w.astype(jnp.bfloat16),
            preferred_element_type=jnp.float32,
        )
        + b
    )
    # Full-precision reference -> loose sanity check (bf16 weights, K=768).
    ref_f32 = ref_feat @ w + b

    assert out.shape == (N, NUM_CLASSES)
    assert jnp.allclose(out, ref_bf16, atol=2e-3, rtol=2e-3)
    assert jnp.allclose(out, ref_f32, atol=5e-2, rtol=5e-2)
    # Padded columns carry zero weights/bias -> exactly zero logits.
    assert jnp.all(out_pad[:, NUM_CLASSES:] == 0.0)

    print("KERNEL_OK")
</pallas_src>

<mosaic_0001>
module attributes {stable_mosaic.version = 11 : i64} {
  func.func @wrap_fused_kernel(%arg0: memref<2x768xf32, #tpu.memory_space<vmem>>, %arg1: memref<1x768xf32, #tpu.memory_space<vmem>>, %arg2: memref<1x768xf32, #tpu.memory_space<vmem>>, %arg3: memref<768x128xbf16, #tpu.memory_space<vmem>>, %arg4: memref<1x128xf32, #tpu.memory_space<vmem>>, %arg5: memref<2x128xf32, #tpu.memory_space<vmem>>) attributes {dimension_semantics = [], scalar_prefetch = 0 : i64, scratch_operands = 0 : i64, tpu.core_type = #tpu.core_type<tc>} {
    %c0 = arith.constant 0 : index
    %c0_0 = arith.constant 0 : index
    %0 = vector.load %arg0[%c0, %c0_0] : memref<2x768xf32, #tpu.memory_space<vmem>>, vector<2x768xf32>
    %c0_1 = arith.constant 0 : index
    %c0_2 = arith.constant 0 : index
    %1 = vector.load %arg1[%c0_1, %c0_2] : memref<1x768xf32, #tpu.memory_space<vmem>>, vector<1x768xf32>
    %2 = vector.broadcast %1 : vector<1x768xf32> to vector<2x768xf32>
    %3 = arith.subf %0, %2 : vector<2x768xf32>
    %c0_3 = arith.constant 0 : index
    %c0_4 = arith.constant 0 : index
    %4 = vector.load %arg2[%c0_3, %c0_4] : memref<1x768xf32, #tpu.memory_space<vmem>>, vector<1x768xf32>
    %5 = vector.broadcast %4 : vector<1x768xf32> to vector<2x768xf32>
    %6 = arith.mulf %3, %5 : vector<2x768xf32>
    %7 = arith.truncf %6 : vector<2x768xf32> to vector<2x768xbf16>
    %c0_5 = arith.constant 0 : index
    %c0_6 = arith.constant 0 : index
    %8 = vector.load %arg3[%c0_5, %c0_6] : memref<768x128xbf16, #tpu.memory_space<vmem>>, vector<768x128xbf16>
    %cst = arith.constant dense<0.000000e+00> : vector<2x128xf32>
    %9 = tpu.matmul %7, %8, %cst {dimension_numbers = #tpu.dot_dimension_numbers<[1], [0], [0], [1], [0, 0, 1, 1], [], []>} : vector<2x768xbf16>, vector<768x128xbf16>, vector<2x128xf32> -> vector<2x128xf32>
    %c0_7 = arith.constant 0 : index
    %c0_8 = arith.constant 0 : index
    %10 = vector.load %arg4[%c0_7, %c0_8] : memref<1x128xf32, #tpu.memory_space<vmem>>, vector<1x128xf32>
    %11 = vector.broadcast %10 : vector<1x128xf32> to vector<2x128xf32>
    %12 = arith.addf %9, %11 : vector<2x128xf32>
    %c0_9 = arith.constant 0 : index
    %c0_10 = arith.constant 0 : index
    %13 = vector.load %arg5[%c0_9, %c0_10] : memref<2x128xf32, #tpu.memory_space<vmem>>, vector<2x128xf32>
    tpu.vector_store %arg5[%c0_9, %c0_10], %12 {strides = array<i32>} : memref<2x128xf32, #tpu.memory_space<vmem>>, vector<2x128xf32>,
    return
  }
}

</mosaic_0001>

<bundles_post_ra>
// kernel: wrap_forward.1
= control target key start
LH: loop header
LB: loop body
LE: loop exit
PB: predicated region body
PF: predicated region fallthrough
CT: control target
= control target key end

     0   :  { %10 = vsyncpa [#allocation3], 0  ;;  %s1004_s0 = inlined_call_operand.vmem [shape: f32[2,768], index: 0, kind: input, shape index: {}]   ;;  %s1005_s1 = inlined_call_operand.vmem [shape: f32[1,768], index: 1, kind: input, shape index: {}]   ;;  %s1006_s2 = inlined_call_operand.vmem [shape: f32[1,768], index: 2, kind: input, shape index: {}]   ;;  %s1007_s3 = inlined_call_operand.hbm [shape: bf16[768,128], index: 3, kind: input, shape index: {}]   ;;  %s1008_s4 = inlined_call_operand.vmem [shape: f32[1,128], index: 4, kind: input, shape index: {}]   ;;  %s1009_s5 = inlined_call_operand.hbm [shape: f32[2,128], index: 5, kind: output, shape index: {}]  }
   0x1   :  { %11 = vsyncpa [#allocation4], 0  ;;  %s930_s18 = smov [#allocation2]   ;;  %s882_s22 = scalar_lea.hbm %s1007_s3, 6144 }
   0x2   :  { %s23_s19 = sshll.u32 %s930_s18, 4  ;;  %p883_p0 = scmp.ne.s32.totalorder %s1007_s3, %s882_s22  ;;  %s24_s19 = int_to_ptr.vmem [resolvable:$true] %s23_s19 }
   0x3   :  { %p886_p1 = scmp.lt.u32.totalorder %s882_s22, %s1007_s3 }
   0x5   :  { %p888_p2 = pnand %p886_p1, %p883_p0 }
   0x7   :  { %891 = shalt.err (!%p888_p2)
}
   0x8   :  { %s892_s27 = scalar_lea.vmem %s24_s19, 6144  ;;  %p897_p4 = scmp.lt.s32.totalorder %s24_s19, %s24_s19 }
   0x9   :  { %p893_p3 = scmp.ne.s32.totalorder %s24_s19, %s892_s27  ;;  %p898_p5 = scmp.lt.s32.totalorder %s892_s27, %s892_s27 }
   0xb   :  { %p899_p6 = por %p898_p5, %p897_p4 }
   0xd   :  { %p900_p7 = pnand %p899_p6, %p893_p3 }
   0xf   :  { %903 = shalt.err (!%p900_p7)
}
  0x10   :  { %s931_s28 = smov 64   ;;  %s932_s29 = smov 4  }
  0x11   :  { %29 = dma.hbm_to_vmem [thread:$0]  %s1007_s3, 6144, %s24_s19, [#allocation3], %s931_s28, %s931_s28, %s932_s29  }
  0x12   :  { %926 = dma.done.wait [#allocation3], 6144  }
  0x13   :  { %927 = vsyncadd [#allocation3], 4294961152  ;;  %v834_v0 = vld [vmem:[#allocation2 + $0x40] sm:$0xff]   ;;  %v838_v4 = vld [vmem:[#allocation2 + $0x48] sm:$0xff]   ;;  %v40_v18 = vlaneseq  ;;  %v933_v26 = vmov 1983009808  }
  0x14   :  { %v835_v1 = vld [vmem:[#allocation2] sm:$0xff]   ;;  %763 = vmatprep.subr.bf16.mxu0 %v834_v0  ;;  %v839_v5 = vld [vmem:[#allocation2 + $0x8] sm:$0xff]   ;;  %v842_v8 = vld [vmem:[#allocation2 + $0x50] sm:$0xff]   ;;  %v67_v27 = vunpack.c.l.s4 %v933_v26  ;;  %s934_s13 = smov [#allocation5]  }
  0x15   :  { %v836_v2 = vld [vmem:[#allocation2 + $0xc0] sm:$0xff]   ;;  %764 = vmatpush3.bf16.msra.mxu0 %v835_v1  ;;  %v840_v6 = vld [vmem:[#allocation2 + $0xc8] sm:$0xff]   ;;  %v843_v9 = vld [vmem:[#allocation2 + $0x10] sm:$0xff]   ;;  %v41_v23 = vshrl.u32 %v40_v18, 7  ;;  %s705_s14 = sshll.u32 %s934_s13, 4  ;;  %s706_s14 = int_to_ptr.vmem [resolvable:$true] %s705_s14 }
  0x16   :  { %v837_v3 = vld [vmem:[#allocation2 + $0x80] sm:$0xff]   ;;  %785 = vmatprep.subr.bf16.mxu1 %v836_v2  ;;  %765 = vmatprep.subr.bf16.mxu0 %v838_v4  ;;  %v841_v7 = vld [vmem:[#allocation2 + $0x88] sm:$0xff]   ;;  %v844_v10 = vld [vmem:[#allocation2 + $0xd0] sm:$0xff]   ;;  %v68_v35 = vunpack.c.0.s8 %v67_v27  ;;  %p909_p9 = scmp.lt.s32.totalorder %s706_s14, %s706_s14 }
  0x17   :  { %786 = vmatpush3.bf16.msra.mxu1 %v837_v3  ;;  %v845_v11 = vld [vmem:[#allocation2 + $0x90] sm:$0xff]   ;;  %v846_v12 = vld [vmem:[#allocation2 + $0x58] sm:$0xff]   ;;  %v850_v16 = vld [vmem:[#allocation2 + $0x60] sm:$0xff]   ;;  %v42_v30 = vsub.s32 0, %v41_v23  ;;  %v46_v32 = vsub.s32 1, %v41_v23  ;;  %v50_v34 = vsub.s32 2, %v41_v23 }
  0x18   :  { %787 = vmatprep.subr.bf16.mxu1 %v840_v6  ;;  %v847_v13 = vld [vmem:[#allocation2 + $0x18] sm:$0xff]   ;;  %v851_v17 = vld [vmem:[#allocation2 + $0x20] sm:$0xff]   ;;  %v854_v21 = vld [vmem:[#allocation2 + $0x68] sm:$0xff]   ;;  %v54_v37 = vsub.s32 3, %v41_v23  ;;  %v71_v41 = vsub.s32 %v68_v35, %v41_v23  ;;  %v58_v55 = vsub.s32 4, %v41_v23  ;;  %v62_v56 = vsub.s32 5, %v41_v23 }
  0x19   :  { %766 = vmatpush3.bf16.msra.mxu0 %v839_v5  ;;  %v848_v14 = vld [vmem:[#allocation2 + $0xd8] sm:$0xff]   ;;  %v852_v19 = vld [vmem:[#allocation2 + $0xe0] sm:$0xff]   ;;  %v855_v22 = vld [vmem:[#allocation2 + $0x28] sm:$0xff]  }
  0x1a   :  { %767 = vmatprep.subr.bf16.mxu0 %v842_v8  ;;  %v849_v15 = vld [vmem:[#allocation2 + $0x98] sm:$0xff]   ;;  %v853_v20 = vld [vmem:[#allocation2 + $0xa0] sm:$0xff]   ;;  %v856_v24 = vld [vmem:[#allocation2 + $0xe8] sm:$0xff]  }
  0x1b   :  { %788 = vmatpush3.bf16.msra.mxu1 %v841_v7  ;;  %v857_v25 = vld [vmem:[#allocation2 + $0xa8] sm:$0xff]   ;;  %v858_v28 = vld [vmem:[#allocation2 + $0x70] sm:$0xff]   ;;  %v862_v36 = vld [vmem:[#allocation2 + $0x78] sm:$0xff]  }
  0x1c   :  { %789 = vmatprep.subr.bf16.mxu1 %v844_v10  ;;  %v859_v29 = vld [vmem:[#allocation2 + $0x30] sm:$0xff]   ;;  %v863_v38 = vld [vmem:[#allocation2 + $0x38] sm:$0xff]   ;;  %v38_v40 = vld [vmem:[%s1005_s1] sm:$0x3f] }
  0x1d   :  { %768 = vmatpush3.bf16.msra.mxu0 %v843_v9  ;;  %v860_v31 = vld [vmem:[#allocation2 + $0xf0] sm:$0xff]   ;;  %v864_v39 = vld [vmem:[#allocation2 + $0xf8] sm:$0xff]   ;;  %v93_v42 = vld [vmem:[%s1006_s2] sm:$0x3f]  ;;  %v43_v43 = vrot.slane %v38_v40, %v42_v30  ;;  %v47_v44 = vrot.slane %v38_v40, %v46_v32  ;;  %v51_v45 = vrot.slane %v38_v40, %v50_v34  ;;  %v55_v46 = vrot.slane %v38_v40, %v54_v37 }
  0x1e   :  { %769 = vmatprep.subr.bf16.mxu0 %v846_v12  ;;  %v861_v33 = vld [vmem:[#allocation2 + $0xb0] sm:$0xff]   ;;  %v865_v47 = vld [vmem:[#allocation2 + $0xb8] sm:$0xff]   ;;  %v98_v48 = vrot.slane %v93_v42, %v42_v30  ;;  %v102_v49 = vrot.slane %v93_v42, %v46_v32  ;;  %v106_v50 = vrot.slane %v93_v42, %v50_v34  ;;  %v110_v51 = vrot.slane %v93_v42, %v54_v37  ;;  %v866_v52 = vld [vmem:[#allocation2 + $0x140] sm:$0xff]  }
  0x1f   :  { %790 = vmatpush3.bf16.msra.mxu1 %v845_v11  ;;  %v64_v53 = vcombine.low %v43_v43, %v47_v44  ;;  %v65_v54 = vcombine.low %v51_v45, %v55_v46  ;;  %v36_v61 = vld [vmem:[%s1004_s0] sm:$0xff]  ;;  %v59_v1 = vrot.slane %v38_v40, %v58_v55  ;;  %v63_v2 = vrot.slane %v38_v40, %v62_v56  ;;  %v870_v27 = vld [vmem:[#allocation2 + $0x150] sm:$0xff]   ;;  %v877_v37 = vld [vmem:[#allocation2 + $0x128] sm:$0xff]  }
  0x20   :  { %791 = vmatprep.subr.bf16.mxu1 %v848_v14  ;;  %v119_v57 = vcombine.low %v98_v48, %v102_v49  ;;  %v120_v58 = vcombine.low %v106_v50, %v110_v51  ;;  %v114_v5 = vrot.slane %v93_v42, %v58_v55  ;;  %v118_v6 = vrot.slane %v93_v42, %v62_v56  ;;  %v867_v18 = vld [vmem:[#allocation2 + $0x100] sm:$0xff]   ;;  %v880_v40 = vld [vmem:[#allocation2 + $0x178] sm:$0xff]  }
  0x21   :  { %770 = vmatpush3.bf16.msra.mxu0 %v847_v13  ;;  %v72_v59 = vrot.slane %v64_v53, %v71_v41  ;;  %v79_v60 = vrot.slane %v65_v54, %v71_v41  ;;  %v81_v8 = vcombine.low %v59_v1, %v63_v2  ;;  %v874_v34 = vld [vmem:[#allocation2 + $0x160] sm:$0xff]  }
  0x22   :  { %771 = vmatprep.subr.bf16.mxu0 %v850_v16  ;;  %v127_v62 = vrot.slane %v119_v57, %v71_v41  ;;  %v134_v63 = vrot.slane %v120_v58, %v71_v41  ;;  %v136_v11 = vcombine.low %v114_v5, %v118_v6  ;;  %v875_v35 = vld [vmem:[#allocation2 + $0x120] sm:$0xff]  }
  0x23   :  { %792 = vmatpush3.bf16.msra.mxu1 %v849_v15  ;;  %v80_v0 = vcombine.low %v72_v59, %v79_v60  ;;  %v88_v14 = vrot.slane %v81_v8, %v71_v41  ;;  %v714_v44 = vld [vmem:[%s1008_s4] ss:$0 sm:$0xff]  ;;  %s904_s4 = scalar_lea.vmem %s706_s14, 32 }
  0x24   :  { %793 = vmatprep.subr.bf16.mxu1 %v852_v19  ;;  %v135_v3 = vcombine.low %v127_v62, %v134_v63  ;;  %v143_v19 = vrot.slane %v136_v11, %v71_v41  ;;  %p905_p8 = scmp.ne.s32.totalorder %s706_s14, %s904_s4  ;;  %p910_p10 = scmp.lt.s32.totalorder %s904_s4, %s904_s4 }
  0x25   :  { %772 = vmatpush3.bf16.msra.mxu0 %v851_v17  ;;  %v91_v4 = vsub.f32 %v36_v61, %v80_v0 }
  0x26   :  { %773 = vmatprep.subr.bf16.mxu0 %v854_v21  ;;  %v868_v21 = vld [vmem:[#allocation2 + $0x148] sm:$0xff]   ;;  %p911_p11 = por %p910_p10, %p909_p9 }
  0x27   :  { %794 = vmatpush3.bf16.msra.mxu1 %v853_v20  ;;  %v146_v7 = vmul.f32 %v135_v3, %v91_v4 }
  0x28   :  { %795 = vmatprep.subr.bf16.mxu1 %v856_v24  ;;  %p912_p12 = pnand %p911_p11, %p905_p8 }
  0x29   :  { %774 = vmatpush3.bf16.msra.mxu0 %v855_v22  ;;  %v157_v9 = vrot.slane %v146_v7, %v71_v41  ;;  %v150_v10 = vcombine.high %v146_v7, %v146_v7  ;;  %v37_v22 = vld [vmem:[%s1004_s0 + $0x8] sm:$0xf] }
  0x2a   :  { %775 = vmatprep.subr.bf16.mxu0 %v858_v28  ;;  %v92_v24 = vsub.f32 %v37_v22, %v88_v14 }
  0x2b   :  { %796 = vmatpush3.bf16.msra.mxu1 %v857_v25  ;;  %v165_v12 = vcombine.high %v157_v9, %v157_v9  ;;  %v164_v13 = vrot.slane %v150_v10, %v71_v41  ;;  %v181_v15 = vpack.c.bf16 %v157_v9, %v157_v9  ;;  %v869_v25 = vld [vmem:[#allocation2 + $0x108] sm:$0xff]  }
  0x2c   :  { %797 = vmatprep.subr.bf16.mxu1 %v860_v31  ;;  %v147_v26 = vmul.f32 %v143_v19, %v92_v24  ;;  %v872_v31 = vld [vmem:[#allocation2 + $0x158] sm:$0xff]  }
  0x2d   :  { %776 = vmatpush3.bf16.msra.mxu0 %v859_v29  ;;  %v182_v16 = vpack.c.bf16 %v165_v12, %v165_v12  ;;  %v166_v17 = vcombine.high %v164_v13, %v164_v13  ;;  %v183_v20 = vpack.c.bf16 %v164_v13, %v164_v13  ;;  %v871_v29 = vld [vmem:[#allocation2 + $0x110] sm:$0xff]  }
  0x2e   :  { %777 = vmatprep.subr.bf16.mxu0 %v862_v36  ;;  %v173_v28 = vrot.slane %v147_v26, %v71_v41  ;;  %v876_v36 = vld [vmem:[#allocation2 + $0x168] sm:$0xff]   ;;  %v881_v41 = vld [vmem:[#allocation2 + $0x138] sm:$0xff]  }
  0x2f   :  { %798 = vmatpush3.bf16.msra.mxu1 %v861_v33  ;;  %610 = vmatprep.mubr.bf16.mxu0 %v182_v16  ;;  %v184_v23 = vpack.c.bf16 %v166_v17, %v166_v17  ;;  %v873_v33 = vld [vmem:[#allocation2 + $0x118] sm:$0xff]  }
  0x30   :  { %799 = vmatprep.subr.bf16.mxu1 %v864_v39  ;;  %v174_v30 = vcombine.high %v173_v28, %v173_v28  ;;  %v879_v39 = vld [vmem:[#allocation2 + $0x130] sm:$0xff]   ;;  %v185_v42 = vpack.c.bf16 %v173_v28, %v173_v28 }
  0x31   :  { %778 = vmatpush3.bf16.msra.mxu0 %v863_v38  ;;  %650 = vmatprep.mubr.bf16.mxu1 %v184_v23  ;;  %v878_v38 = vld [vmem:[#allocation2 + $0x170] sm:$0xff]  }
  0x32   :  { %807 = vmatprep.subr.bf16.mxu0 %v866_v52  ;;  %v186_v32 = vpack.c.bf16 %v174_v30, %v174_v30 }
  0x33   :  { %800 = vmatpush3.bf16.msra.mxu1 %v865_v47 }
  0x34   :  { %611 = vmatmul.mubr.bf16.vlgmr.msra.gmra.mrb[0].mxu0 %v181_v15 }
  0x35   :  { %808 = vmatpush3.bf16.msra.mxu0 %v867_v18  ;;  %690 = vmatprep.mubr.bf16.mxu0 %v186_v32 }
  0x36   :  { %651 = vmatmul.mubr.bf16.vlgmr.msra.gmra.mrb[0].mxu1 %v183_v20  ;;  %809 = vmatprep.subr.bf16.mxu0 %v868_v21 }
  0x39   :  { %810 = vmatpush3.bf16.msra.mxu0 %v869_v25 }
  0x3a   :  { %811 = vmatprep.subr.bf16.mxu0 %v870_v27 }
  0x3d   :  { %812 = vmatpush3.bf16.msra.mxu0 %v871_v29 }
  0x3e   :  { %813 = vmatprep.subr.bf16.mxu0 %v872_v31 }
  0x41   :  { %814 = vmatpush3.bf16.msra.mxu0 %v873_v33 }
  0x42   :  { %815 = vmatprep.subr.bf16.mxu0 %v874_v34 }
  0x45   :  { %816 = vmatpush3.bf16.msra.mxu0 %v875_v35 }
  0x46   :  { %817 = vmatprep.subr.bf16.mxu0 %v876_v36 }
  0x49   :  { %818 = vmatpush3.bf16.msra.mxu0 %v877_v37 }
  0x4a   :  { %819 = vmatprep.subr.bf16.mxu0 %v878_v38 }
  0x4d   :  { %820 = vmatpush3.bf16.msra.mxu0 %v879_v39 }
  0x4e   :  { %821 = vmatprep.subr.bf16.mxu0 %v880_v40 }
  0x51   :  { %822 = vmatpush3.bf16.msra.mxu0 %v881_v41 }
  0x54   :  { %691 = vmatmul.mubr.bf16.vlgmr.msra.gmra.mrb[4].mxu0 %v185_v42 }
 0x107   :  { %v779_v43 = vpop.f32.mrb[0].mxu0 }
 0x108   :  { %v780_v45 = vpop.f32.mrb[1].mxu0 }
 0x109   :  { %v781_v46 = vadd.f32 %v780_v45, %v779_v43  ;;  %v782_v47 = vpop.f32.mrb[2].mxu0  ;;  %v801_v48 = vpop.f32.mrb[0].mxu1 }
 0x10a   :  { %v783_v49 = vpop.f32.mrb[3].mxu0  ;;  %v802_v50 = vpop.f32.mrb[1].mxu1 }
 0x10b   :  { %v613_v51 = vadd.f32 %v781_v46, %v714_v44  ;;  %v803_v52 = vadd.f32 %v802_v50, %v801_v48  ;;  %v804_v53 = vpop.f32.mrb[2].mxu1 }
 0x10c   :  { %v805_v54 = vpop.f32.mrb[3].mxu1 }
 0x10d   :  { %v653_v55 = vadd.f32 %v803_v52, %v613_v51 }
 0x127   :  { %v823_v56 = vpop.f32.mrb[4].mxu0 }
 0x128   :  { %v824_v57 = vpop.f32.mrb[5].mxu0 }
 0x129   :  { %v825_v58 = vadd.f32 %v824_v57, %v823_v56  ;;  %v826_v59 = vpop.f32.mrb[6].mxu0 }
 0x12a   :  { %v827_v60 = vpop.f32.mrb[7].mxu0 }
 0x12b   :  { %v693_v61 = vadd.f32 %v825_v58, %v653_v55 }
 0x12d   :  { %698 = vst [vmem:[#allocation5] sm:$0x3] %v693_v61 }
 0x12e   :  { %915 = shalt.err (!%p912_p12)
}
 0x12f   :  { %s916_s17 = scalar_lea.hbm %s1009_s5, 32 }
 0x130   :  { %p917_p13 = scmp.ne.s32.totalorder %s1009_s5, %s916_s17  ;;  %p920_p0 = scmp.lt.u32.totalorder %s916_s17, %s1009_s5 }
 0x132   :  { %p922_p1 = pnand %p920_p0, %p917_p13 }
 0x134   :  { %925 = shalt.err (!%p922_p1)
}
 0x135   :  { %708 = dma.vmem_to_hbm [thread:$0]  %s706_s14, 32, %s1009_s5, [#allocation4]  }
 0x136   :  { %928 = dma.done.wait [#allocation4], 32  }
 0x137   :  { %929 = vsyncadd [#allocation4], 4294967264 }
 0x138   :  { %712 = vsyncpa [#allocation3], 1 }
 0x139   :  { %713 = vsyncpa [#allocation4], 1 }

</bundles_post_ra>
